<compile_context>
chip_gen: v6e
topology: v6e:2x2x1
jax: 0.10.0
libtpu: 0.0.40
codegen_flags: <defaults>
</compile_context>

<pallas_src>
import functools

import numpy as np
import jax
import jax.numpy as jnp
from jax import lax
from jax.experimental import pallas as pl
from jax.experimental.pallas import tpu as pltpu


# --------------------------------- kernel ----------------------------------

def _eacb_kernel(dil, B, H, W, C,
                 x_ref,
                 w1_ref, b1_ref,
                 w2_ref, bn1s_ref, bn1t_ref,
                 w3_ref, b3_ref,
                 w4_ref, bn2s_ref, bn2t_ref,
                 eca_ref,
                 o_ref):
    WC = W * C
    BH = B * H
    f32 = jnp.float32
    bf16 = jnp.bfloat16

    x = x_ref[...]                                       # (BH, WC) f32, lane dense

    # Per-image row index h in [0, H): built once, shared by both 3x1 convs'
    # halo masks (also kills any cross-image bleed from the circular rolls).
    h_idx = lax.broadcasted_iota(jnp.int32, (B, H, WC), 1).reshape(BH, WC)

    def conv3x1(v, w_ref, d):
        # One fused (BH, WC) @ (WC, 3*WC) matmul for all 3 taps; the +/- d row
        # shifts are realised in-register: sublane roll (XLU) + halo mask (VPU),
        # no VMEM round trip, no misaligned sublane reads.
        y = jnp.dot(v.astype(bf16), w_ref[...], preferred_element_type=f32)
        t0 = y[:, 0:WC]                                  # tap 0 -> needs rows h - d
        t1 = y[:, WC:2 * WC]                             # tap 1 -> rows h
        t2 = y[:, 2 * WC:3 * WC]                         # tap 2 -> needs rows h + d
        r0 = jnp.where(h_idx >= d, pltpu.roll(t0, d, axis=0), 0.0)
        r2 = jnp.where(h_idx < H - d, pltpu.roll(t2, BH - d, axis=0), 0.0)
        return r0 + t1 + r2

    def conv1x3(v, w_ref):
        # Taps, W-shifts and zero padding folded into a banded block matrix ->
        # a single lane-dense (BH, WC) @ (WC, WC) matmul, no data movement.
        return jnp.dot(v.astype(bf16), w_ref[...], preferred_element_type=f32)

    o = jnp.maximum(conv3x1(x, w1_ref, 1) + b1_ref[...], 0.0)     # conv3x1_1 + ReLU
    o = conv1x3(o, w2_ref) * bn1s_ref[...] + bn1t_ref[...]        # conv1x3_1 + BN1 (bias folded)
    o = jnp.maximum(o, 0.0)                                       # ReLU
    o = jnp.maximum(conv3x1(o, w3_ref, dil) + b3_ref[...], 0.0)   # conv3x1_2 + ReLU
    o = conv1x3(o, w4_ref) * bn2s_ref[...] + bn2t_ref[...]        # conv1x3_2 + BN2 (bias folded)
    # Dropout2d(p=0): identity (the module skips dropout when p == 0).

    # ECA, batched over images: per-image sublane sum over H, then ONE
    # (B, WC) @ (WC, WC) matmul whose weight pools over W, applies the 5-tap
    # channel band, scales by 1/(H*W) and re-broadcasts to every pixel group.
    rs = jnp.sum(o.reshape(B, H, WC), axis=1)                     # (B, WC)
    z = jnp.dot(rs.astype(bf16), eca_ref[...], preferred_element_type=f32)
    gate = jax.nn.sigmoid(z)                                      # (B, WC)
    gate_full = jnp.broadcast_to(gate[:, None, :], (B, H, WC)).reshape(BH, WC)

    o_ref[...] = jnp.maximum(o * gate_full + x, 0.0)              # relu(output + input)


# ------------------------------ host wrapper -------------------------------

def eacb_forward(x_nhwc, params, dilated):
    B, H, W, C = x_nhwc.shape
    WC = W * C
    BH = B * H
    assert int(dilated) < H, "dilation must be smaller than the image height"

    x_packed = x_nhwc.reshape(BH, WC)           # lane-dense packing (contiguous, free)
    kern = functools.partial(_eacb_kernel, int(dilated), B, H, W, C)

    # No grid: one invocation, whole operands resident in VMEM (no pipeline,
    # no double-buffered weights).  Batch is folded into the matmul M dim, so
    # single-TC chips (v5e/v6e) pay one MXU weight push per conv total.
    flops = int(2 * BH * WC * (2 * 3 * WC + 2 * WC) + 2 * B * WC * WC)
    bytes_accessed = int(2 * BH * WC * 4
                         + sum(int(p.size) * p.dtype.itemsize for p in params))
    out = pl.pallas_call(
        kern,
        out_shape=jax.ShapeDtypeStruct((BH, WC), jnp.float32),
        cost_estimate=pl.CostEstimate(flops=flops,
                                      transcendentals=int(B * WC),
                                      bytes_accessed=bytes_accessed),
    )(x_packed, *params)
    return out.reshape(B, H, W, C)


# -------------------------- parameter packing (host) ------------------------

def pack_params(w1_pt, b1, w2_pt, b2, bn1, w3_pt, b3, w4_pt, b4, bn2, w5,
                dilated, H, W, C, eps=1e-3):
    """PyTorch-layout params -> lane-dense packed kernel params."""
    WC = W * C

    def tile_c(v):                      # (C,) -> (1, W*C): value for packed idx w*C+c is v[c]
        return jnp.asarray(np.tile(np.asarray(v, np.float32), W))[None, :]

    def bn_fold(bn_p, bias):            # eval-mode BN; fold preceding conv bias into shift
        g, bt, m, var = (np.asarray(t, np.float32) for t in bn_p)
        s = g / np.sqrt(var + eps)
        t = bt - m * s + s * np.asarray(bias, np.float32)
        return tile_c(s), tile_c(t)

    def hconv_w(w_pt):                  # (C,C,3,1) -> (WC, 3*WC) bf16, taps side by side
        w = np.asarray(w_pt, np.float32)[:, :, :, 0]            # (Cout, Cin, 3)
        eye = np.eye(W, dtype=np.float32)
        blocks = [np.kron(eye, w[:, :, k].T) for k in range(3)]  # block-diag per tap
        return jnp.asarray(np.concatenate(blocks, axis=1), jnp.bfloat16)

    def wconv_w(w_pt, d):               # (C,C,1,3) -> (WC, WC) banded block matrix, bf16
        w = np.asarray(w_pt, np.float32)[:, :, 0, :]             # (Cout, Cin, 3)
        M = np.zeros((WC, WC), np.float32)
        for wo in range(W):
            for k in range(3):
                wi = wo + (k - 1) * d
                if 0 <= wi < W:
                    M[wi * C:(wi + 1) * C, wo * C:(wo + 1) * C] = w[:, :, k].T
        return jnp.asarray(M, jnp.bfloat16)

    def eca_w(w5_):                     # pool over W + 5-tap band + 1/(H*W) + re-broadcast
        ci = np.arange(C)[:, None]
        co = np.arange(C)[None, :]
        k = ci - co + 2
        band = np.where((k >= 0) & (k < 5),
                        np.asarray(w5_, np.float32)[np.clip(k, 0, 4)],
                        0.0).astype(np.float32)
        E = np.kron(np.ones((W, W), np.float32), band) / float(H * W)
        return jnp.asarray(E, jnp.bfloat16)

    bn1s, bn1t = bn_fold(bn1, b2)       # conv1x3_1 bias folded into BN1 shift
    bn2s, bn2t = bn_fold(bn2, b4)       # conv1x3_2 bias folded into BN2 shift
    return (hconv_w(w1_pt), tile_c(b1),
            wconv_w(w2_pt, 1), bn1s, bn1t,
            hconv_w(w3_pt), tile_c(b3),
            wconv_w(w4_pt, dilated), bn2s, bn2t,
            eca_w(w5))


# ------------------------------ pure-JAX reference ---------------------------

def reference(x_nhwc, w1_pt, b1, w2_pt, b2, bn1, w3_pt, b3, w4_pt, b4, bn2,
              w5, dilated, eps=1e-3):
    dn = ("NHWC", "HWIO", "NHWC")

    def conv(v, w_pt, b, pad, dil):
        w = jnp.transpose(w_pt, (2, 3, 1, 0))  # OIHW -> HWIO
        o = lax.conv_general_dilated(v, w, (1, 1), pad, rhs_dilation=dil,
                                     dimension_numbers=dn)
        return o + b.reshape(1, 1, 1, -1)

    def bn(v, p):
        g, bt, m, var = p
        return (v - m) / jnp.sqrt(var + eps) * g + bt

    d = dilated
    o = jax.nn.relu(conv(x_nhwc, w1_pt, b1, [(1, 1), (0, 0)], (1, 1)))
    o = conv(o, w2_pt, b2, [(0, 0), (1, 1)], (1, 1))
    o = jax.nn.relu(bn(o, bn1))
    o = jax.nn.relu(conv(o, w3_pt, b3, [(d, d), (0, 0)], (d, 1)))
    o = conv(o, w4_pt, b4, [(0, 0), (d, d)], (1, d))
    o = bn(o, bn2)
    # ECA
    C = o.shape[-1]
    y = jnp.mean(o, axis=(1, 2))                      # (B, C)
    yp = jnp.pad(y, ((0, 0), (2, 2)))
    z = sum(yp[:, k:k + C] * w5[k] for k in range(5))
    gate = jax.nn.sigmoid(z)[:, None, None, :]
    return jax.nn.relu(o * gate + x_nhwc)


# ----------------------------------- main ------------------------------------

if __name__ == "__main__":
    B, C, H, W = 2, 8, 16, 16
    dilated = 2
    dropprob = 0.0  # module skips dropout when p == 0 (kernel assumes this)
    eps = 1e-3

    key = jax.random.PRNGKey(0)
    ks = jax.random.split(key, 20)

    # PyTorch-format (OIHW) conv weights, deterministic.
    w1_pt = jax.random.normal(ks[0], (C, C, 3, 1), jnp.float32) * 0.2
    b1 = jax.random.normal(ks[1], (C,), jnp.float32) * 0.1
    w2_pt = jax.random.normal(ks[2], (C, C, 1, 3), jnp.float32) * 0.2
    b2 = jax.random.normal(ks[3], (C,), jnp.float32) * 0.1
    w3_pt = jax.random.normal(ks[4], (C, C, 3, 1), jnp.float32) * 0.2
    b3 = jax.random.normal(ks[5], (C,), jnp.float32) * 0.1
    w4_pt = jax.random.normal(ks[6], (C, C, 1, 3), jnp.float32) * 0.2
    b4 = jax.random.normal(ks[7], (C,), jnp.float32) * 0.1

    bn1 = (1.0 + 0.1 * jax.random.normal(ks[8], (C,), jnp.float32),
           0.1 * jax.random.normal(ks[9], (C,), jnp.float32),
           0.1 * jax.random.normal(ks[10], (C,), jnp.float32),
           jax.random.uniform(ks[11], (C,), jnp.float32, 0.5, 1.5))
    bn2 = (1.0 + 0.1 * jax.random.normal(ks[12], (C,), jnp.float32),
           0.1 * jax.random.normal(ks[13], (C,), jnp.float32),
           0.1 * jax.random.normal(ks[14], (C,), jnp.float32),
           jax.random.uniform(ks[15], (C,), jnp.float32, 0.5, 1.5))

    w5 = jax.random.normal(ks[16], (5,), jnp.float32) * 0.3   # eca conv1d weight

    x_nchw = jax.random.normal(ks[17], (B, C, H, W), jnp.float32)
    x_nhwc = jnp.transpose(x_nchw, (0, 2, 3, 1))

    params = pack_params(w1_pt, b1, w2_pt, b2, bn1, w3_pt, b3, w4_pt, b4, bn2,
                         w5, dilated, H, W, C, eps=eps)

    out = eacb_forward(x_nhwc, params, dilated)
    out = jax.block_until_ready(out)

    ref = reference(x_nhwc, w1_pt, b1, w2_pt, b2, bn1, w3_pt, b3, w4_pt, b4,
                    bn2, w5, dilated, eps=eps)
    ref = jax.block_until_ready(ref)

    max_err = float(jnp.max(jnp.abs(out - ref)))
    assert out.shape == (B, H, W, C)
    # Tolerance sized for bf16 MXU operands (f32 accumulate) against a pure-f32
    # reference: ~2^-9 relative rounding per operand compounded through a
    # 4-conv chain + 2 BNs gives O(1e-2) worst-element error; a genuine bug
    # (wrong tap / shift / band) produces O(0.1-1) error and is still caught.
    if max_err < 5e-2:
        print("KERNEL_OK")
    else:
        print(f"MISMATCH max_err={max_err}")
</pallas_src>

<mosaic_0001>
module attributes {stable_mosaic.version = 11 : i64} {
  func.func @_eacb_kernel(%arg0: memref<32x128xf32, #tpu.memory_space<vmem>>, %arg1: memref<128x384xbf16, #tpu.memory_space<vmem>>, %arg2: memref<1x128xf32, #tpu.memory_space<vmem>>, %arg3: memref<128x128xbf16, #tpu.memory_space<vmem>>, %arg4: memref<1x128xf32, #tpu.memory_space<vmem>>, %arg5: memref<1x128xf32, #tpu.memory_space<vmem>>, %arg6: memref<128x384xbf16, #tpu.memory_space<vmem>>, %arg7: memref<1x128xf32, #tpu.memory_space<vmem>>, %arg8: memref<128x128xbf16, #tpu.memory_space<vmem>>, %arg9: memref<1x128xf32, #tpu.memory_space<vmem>>, %arg10: memref<1x128xf32, #tpu.memory_space<vmem>>, %arg11: memref<128x128xbf16, #tpu.memory_space<vmem>>, %arg12: memref<32x128xf32, #tpu.memory_space<vmem>>) attributes {dimension_semantics = [], scalar_prefetch = 0 : i64, scratch_operands = 0 : i64, tpu.core_type = #tpu.core_type<tc>} {
    %c0 = arith.constant 0 : index
    %c0_0 = arith.constant 0 : index
    %0 = vector.load %arg0[%c0, %c0_0] : memref<32x128xf32, #tpu.memory_space<vmem>>, vector<32x128xf32>
    %1 = tpu.iota {dimensions = array<i32: 1>} : vector<2x16x128xi32>
    %2 = vector.shape_cast %1 : vector<2x16x128xi32> to vector<32x128xi32>
    %3 = arith.truncf %0 : vector<32x128xf32> to vector<32x128xbf16>
    %c0_1 = arith.constant 0 : index
    %c0_2 = arith.constant 0 : index
    %4 = vector.load %arg1[%c0_1, %c0_2] : memref<128x384xbf16, #tpu.memory_space<vmem>>, vector<128x384xbf16>
    %cst = arith.constant dense<0.000000e+00> : vector<32x384xf32>
    %5 = tpu.matmul %3, %4, %cst {dimension_numbers = #tpu.dot_dimension_numbers<[1], [0], [0], [1], [0, 0, 1, 1], [], []>} : vector<32x128xbf16>, vector<128x384xbf16>, vector<32x384xf32> -> vector<32x384xf32>
    %6 = vector.extract_strided_slice %5 {offsets = [0, 0], sizes = [32, 128], strides = [1, 1]} : vector<32x384xf32> to vector<32x128xf32>
    %7 = vector.extract_strided_slice %5 {offsets = [0, 128], sizes = [32, 128], strides = [1, 1]} : vector<32x384xf32> to vector<32x128xf32>
    %8 = vector.extract_strided_slice %5 {offsets = [0, 256], sizes = [32, 128], strides = [1, 1]} : vector<32x384xf32> to vector<32x128xf32>
    %c1_i32 = arith.constant 1 : i32
    %9 = vector.broadcast %c1_i32 : i32 to vector<32x128xi32>
    %10 = arith.cmpi sge, %2, %9 : vector<32x128xi32>
    %c1_i32_3 = arith.constant 1 : i32
    %11 = tpu.dynamic_rotate %6 by %c1_i32_3 dim 0 : vector<32x128xf32>, i32 -> vector<32x128xf32>
    %cst_4 = arith.constant 0.000000e+00 : f32
    %12 = vector.broadcast %cst_4 : f32 to vector<32x128xf32>
    %13 = arith.select %10, %11, %12 : vector<32x128xi1>, vector<32x128xf32>
    %c15_i32 = arith.constant 15 : i32
    %14 = vector.broadcast %c15_i32 : i32 to vector<32x128xi32>
    %15 = arith.cmpi slt, %2, %14 : vector<32x128xi32>
    %c31_i32 = arith.constant 31 : i32
    %16 = tpu.dynamic_rotate %8 by %c31_i32 dim 0 : vector<32x128xf32>, i32 -> vector<32x128xf32>
    %cst_5 = arith.constant 0.000000e+00 : f32
    %17 = vector.broadcast %cst_5 : f32 to vector<32x128xf32>
    %18 = arith.select %15, %16, %17 : vector<32x128xi1>, vector<32x128xf32>
    %19 = arith.addf %13, %7 : vector<32x128xf32>
    %20 = arith.addf %19, %18 : vector<32x128xf32>
    %c0_6 = arith.constant 0 : index
    %c0_7 = arith.constant 0 : index
    %21 = vector.load %arg2[%c0_6, %c0_7] : memref<1x128xf32, #tpu.memory_space<vmem>>, vector<1x128xf32>
    %22 = vector.broadcast %21 : vector<1x128xf32> to vector<32x128xf32>
    %23 = arith.addf %20, %22 : vector<32x128xf32>
    %cst_8 = arith.constant 0.000000e+00 : f32
    %24 = vector.broadcast %cst_8 : f32 to vector<32x128xf32>
    %25 = arith.maximumf %23, %24 : vector<32x128xf32>
    %26 = arith.truncf %25 : vector<32x128xf32> to vector<32x128xbf16>
    %c0_9 = arith.constant 0 : index
    %c0_10 = arith.constant 0 : index
    %27 = vector.load %arg3[%c0_9, %c0_10] : memref<128x128xbf16, #tpu.memory_space<vmem>>, vector<128x128xbf16>
    %cst_11 = arith.constant dense<0.000000e+00> : vector<32x128xf32>
    %28 = tpu.matmul %26, %27, %cst_11 {dimension_numbers = #tpu.dot_dimension_numbers<[1], [0], [0], [1], [0, 0, 1, 1], [], []>} : vector<32x128xbf16>, vector<128x128xbf16>, vector<32x128xf32> -> vector<32x128xf32>
    %c0_12 = arith.constant 0 : index
    %c0_13 = arith.constant 0 : index
    %29 = vector.load %arg4[%c0_12, %c0_13] : memref<1x128xf32, #tpu.memory_space<vmem>>, vector<1x128xf32>
    %30 = vector.broadcast %29 : vector<1x128xf32> to vector<32x128xf32>
    %31 = arith.mulf %28, %30 : vector<32x128xf32>
    %c0_14 = arith.constant 0 : index
    %c0_15 = arith.constant 0 : index
    %32 = vector.load %arg5[%c0_14, %c0_15] : memref<1x128xf32, #tpu.memory_space<vmem>>, vector<1x128xf32>
    %33 = vector.broadcast %32 : vector<1x128xf32> to vector<32x128xf32>
    %34 = arith.addf %31, %33 : vector<32x128xf32>
    %cst_16 = arith.constant 0.000000e+00 : f32
    %35 = vector.broadcast %cst_16 : f32 to vector<32x128xf32>
    %36 = arith.maximumf %34, %35 : vector<32x128xf32>
    %37 = arith.truncf %36 : vector<32x128xf32> to vector<32x128xbf16>
    %c0_17 = arith.constant 0 : index
    %c0_18 = arith.constant 0 : index
    %38 = vector.load %arg6[%c0_17, %c0_18] : memref<128x384xbf16, #tpu.memory_space<vmem>>, vector<128x384xbf16>
    %cst_19 = arith.constant dense<0.000000e+00> : vector<32x384xf32>
    %39 = tpu.matmul %37, %38, %cst_19 {dimension_numbers = #tpu.dot_dimension_numbers<[1], [0], [0], [1], [0, 0, 1, 1], [], []>} : vector<32x128xbf16>, vector<128x384xbf16>, vector<32x384xf32> -> vector<32x384xf32>
    %40 = vector.extract_strided_slice %39 {offsets = [0, 0], sizes = [32, 128], strides = [1, 1]} : vector<32x384xf32> to vector<32x128xf32>
    %41 = vector.extract_strided_slice %39 {offsets = [0, 128], sizes = [32, 128], strides = [1, 1]} : vector<32x384xf32> to vector<32x128xf32>
    %42 = vector.extract_strided_slice %39 {offsets = [0, 256], sizes = [32, 128], strides = [1, 1]} : vector<32x384xf32> to vector<32x128xf32>
    %c2_i32 = arith.constant 2 : i32
    %43 = vector.broadcast %c2_i32 : i32 to vector<32x128xi32>
    %44 = arith.cmpi sge, %2, %43 : vector<32x128xi32>
    %c2_i32_20 = arith.constant 2 : i32
    %45 = tpu.dynamic_rotate %40 by %c2_i32_20 dim 0 : vector<32x128xf32>, i32 -> vector<32x128xf32>
    %cst_21 = arith.constant 0.000000e+00 : f32
    %46 = vector.broadcast %cst_21 : f32 to vector<32x128xf32>
    %47 = arith.select %44, %45, %46 : vector<32x128xi1>, vector<32x128xf32>
    %c14_i32 = arith.constant 14 : i32
    %48 = vector.broadcast %c14_i32 : i32 to vector<32x128xi32>
    %49 = arith.cmpi slt, %2, %48 : vector<32x128xi32>
    %c30_i32 = arith.constant 30 : i32
    %50 = tpu.dynamic_rotate %42 by %c30_i32 dim 0 : vector<32x128xf32>, i32 -> vector<32x128xf32>
    %cst_22 = arith.constant 0.000000e+00 : f32
    %51 = vector.broadcast %cst_22 : f32 to vector<32x128xf32>
    %52 = arith.select %49, %50, %51 : vector<32x128xi1>, vector<32x128xf32>
    %53 = arith.addf %47, %41 : vector<32x128xf32>
    %54 = arith.addf %53, %52 : vector<32x128xf32>
    %c0_23 = arith.constant 0 : index
    %c0_24 = arith.constant 0 : index
    %55 = vector.load %arg7[%c0_23, %c0_24] : memref<1x128xf32, #tpu.memory_space<vmem>>, vector<1x128xf32>
    %56 = vector.broadcast %55 : vector<1x128xf32> to vector<32x128xf32>
    %57 = arith.addf %54, %56 : vector<32x128xf32>
    %cst_25 = arith.constant 0.000000e+00 : f32
    %58 = vector.broadcast %cst_25 : f32 to vector<32x128xf32>
    %59 = arith.maximumf %57, %58 : vector<32x128xf32>
    %60 = arith.truncf %59 : vector<32x128xf32> to vector<32x128xbf16>
    %c0_26 = arith.constant 0 : index
    %c0_27 = arith.constant 0 : index
    %61 = vector.load %arg8[%c0_26, %c0_27] : memref<128x128xbf16, #tpu.memory_space<vmem>>, vector<128x128xbf16>
    %cst_28 = arith.constant dense<0.000000e+00> : vector<32x128xf32>
    %62 = tpu.matmul %60, %61, %cst_28 {dimension_numbers = #tpu.dot_dimension_numbers<[1], [0], [0], [1], [0, 0, 1, 1], [], []>} : vector<32x128xbf16>, vector<128x128xbf16>, vector<32x128xf32> -> vector<32x128xf32>
    %c0_29 = arith.constant 0 : index
    %c0_30 = arith.constant 0 : index
    %63 = vector.load %arg9[%c0_29, %c0_30] : memref<1x128xf32, #tpu.memory_space<vmem>>, vector<1x128xf32>
    %64 = vector.broadcast %63 : vector<1x128xf32> to vector<32x128xf32>
    %65 = arith.mulf %62, %64 : vector<32x128xf32>
    %c0_31 = arith.constant 0 : index
    %c0_32 = arith.constant 0 : index
    %66 = vector.load %arg10[%c0_31, %c0_32] : memref<1x128xf32, #tpu.memory_space<vmem>>, vector<1x128xf32>
    %67 = vector.broadcast %66 : vector<1x128xf32> to vector<32x128xf32>
    %68 = arith.addf %65, %67 : vector<32x128xf32>
    %69 = vector.shape_cast %68 : vector<32x128xf32> to vector<2x16x128xf32>
    %cst_33 = arith.constant dense<0.000000e+00> : vector<2x128xf32>
    %70 = vector.multi_reduction <add>, %69, %cst_33 [1] : vector<2x16x128xf32> to vector<2x128xf32>
    %71 = arith.truncf %70 : vector<2x128xf32> to vector<2x128xbf16>
    %c0_34 = arith.constant 0 : index
    %c0_35 = arith.constant 0 : index
    %72 = vector.load %arg11[%c0_34, %c0_35] : memref<128x128xbf16, #tpu.memory_space<vmem>>, vector<128x128xbf16>
    %cst_36 = arith.constant dense<0.000000e+00> : vector<2x128xf32>
    %73 = tpu.matmul %71, %72, %cst_36 {dimension_numbers = #tpu.dot_dimension_numbers<[1], [0], [0], [1], [0, 0, 1, 1], [], []>} : vector<2x128xbf16>, vector<128x128xbf16>, vector<2x128xf32> -> vector<2x128xf32>
    %74 = arith.negf %73 : vector<2x128xf32>
    %75 = math.exp %74 : vector<2x128xf32>
    %cst_37 = arith.constant 1.000000e+00 : f32
    %76 = vector.broadcast %cst_37 : f32 to vector<2x128xf32>
    %77 = arith.addf %76, %75 : vector<2x128xf32>
    %78 = arith.divf %76, %77 : vector<2x128xf32>
    %79 = vector.shape_cast %78 : vector<2x128xf32> to vector<2x1x128xf32>
    %80 = vector.shape_cast %79 : vector<2x1x128xf32> to vector<2x1x128xf32>
    %81 = vector.broadcast %80 : vector<2x1x128xf32> to vector<2x16x128xf32>
    %82 = vector.shape_cast %81 : vector<2x16x128xf32> to vector<32x128xf32>
    %83 = arith.mulf %68, %82 : vector<32x128xf32>
    %84 = arith.addf %83, %0 : vector<32x128xf32>
    %cst_38 = arith.constant 0.000000e+00 : f32
    %85 = vector.broadcast %cst_38 : f32 to vector<32x128xf32>
    %86 = arith.maximumf %84, %85 : vector<32x128xf32>
    %c0_39 = arith.constant 0 : index
    %c0_40 = arith.constant 0 : index
    %87 = vector.load %arg12[%c0_39, %c0_40] : memref<32x128xf32, #tpu.memory_space<vmem>>, vector<32x128xf32>
    tpu.vector_store %arg12[%c0_39, %c0_40], %86 {strides = array<i32>} : memref<32x128xf32, #tpu.memory_space<vmem>>, vector<32x128xf32>,
    return
  }
}

</mosaic_0001>

<bundles_post_ra>
// kernel: tpu_custom_call.1
= control target key start
LH: loop header
LB: loop body
LE: loop exit
PB: predicated region body
PF: predicated region fallthrough
CT: control target
= control target key end

     0   :  { %17 = vsyncpa [#allocation3], 0  ;;  %s1948_s0 = inlined_call_operand.hbm [shape: f32[32,128], index: 0, kind: input, shape index: {}]   ;;  %s1949_s1 = inlined_call_operand.hbm [shape: bf16[128,384], index: 1, kind: input, shape index: {}]   ;;  %s1950_s2 = inlined_call_operand.vmem [shape: f32[1,128], index: 2, kind: input, shape index: {}]   ;;  %s1951_s3 = inlined_call_operand.hbm [shape: bf16[128,128], index: 3, kind: input, shape index: {}]   ;;  %s1952_s4 = inlined_call_operand.vmem [shape: f32[1,128], index: 4, kind: input, shape index: {}]   ;;  %s1953_s5 = inlined_call_operand.vmem [shape: f32[1,128], index: 5, kind: input, shape index: {}]   ;;  %s1954_s6 = inlined_call_operand.hbm [shape: bf16[128,384], index: 6, kind: input, shape index: {}]   ;;  %s1955_s7 = inlined_call_operand.vmem [shape: f32[1,128], index: 7, kind: input, shape index: {}]   ;;  %s1956_s8 = inlined_call_operand.hbm [shape: bf16[128,128], index: 8, kind: input, shape index: {}]   ;;  %s1957_s9 = inlined_call_operand.vmem [shape: f32[1,128], index: 9, kind: input, shape index: {}]   ;;  %s1958_s10 = inlined_call_operand.vmem [shape: f32[1,128], index: 10, kind: input, shape index: {}]   ;;  %s1959_s11 = inlined_call_operand.hbm [shape: bf16[128,128], index: 11, kind: input, shape index: {}]   ;;  %s1960_s12 = inlined_call_operand.hbm [shape: f32[32,128], index: 12, kind: output, shape index: {}]  }
   0x1   :  { %18 = vsyncpa [#allocation6], 0 }
   0x2   :  { %19 = vsyncpa [#allocation9], 0 }
   0x3   :  { %20 = vsyncpa [#allocation12], 0 }
   0x4   :  { %21 = vsyncpa [#allocation4], 0  ;;  %s1734_s21 = smov [#allocation5]  }
   0x5   :  { %s39_s22 = sshll.u32 %s1734_s21, 4  ;;  %s40_s22 = int_to_ptr.vmem [resolvable:$true] %s39_s22 }
   0x6   :  { %s1592_s23 = scalar_lea.vmem %s40_s22, 3072  ;;  %p1597_p1 = scmp.lt.s32.totalorder %s40_s22, %s40_s22 }
   0x7   :  { %p1593_p0 = scmp.ne.s32.totalorder %s40_s22, %s1592_s23  ;;  %p1598_p2 = scmp.lt.s32.totalorder %s1592_s23, %s1592_s23 }
   0x9   :  { %p1599_p3 = por %p1598_p2, %p1597_p1 }
   0xb   :  { %p1600_p4 = pnand %p1599_p3, %p1593_p0 }
   0xd   :  { %1603 = shalt.err (!%p1600_p4)
}
   0xe   :  { %s1735_s24 = smov 192   ;;  %s1736_s25 = smov 12  }
   0xf   :  { %45 = dma.hbm_to_vmem [thread:$0]  %s1949_s1, 3072, %s40_s22, [#allocation6], %s1735_s24, %s1735_s24, %s1736_s25  }
  0x10   :  { %s1737_s28 = smov [#allocation8]   ;;  %s1738_s30 = smov [#allocation2]  }
  0x11   :  { %s69_s29 = sshll.u32 %s1737_s28, 4  ;;  %s27_s13 = sshll.u32 %s1738_s30, 4  ;;  %s70_s29 = int_to_ptr.vmem [resolvable:$true] %s69_s29  ;;  %s28_s13 = int_to_ptr.vmem [resolvable:$true] %s27_s13 }
  0x12   :  { %s1612_s14 = scalar_lea.vmem %s70_s29, 3072  ;;  %p1617_p6 = scmp.lt.s32.totalorder %s70_s29, %s70_s29 }
  0x13   :  { %p1613_p5 = scmp.ne.s32.totalorder %s70_s29, %s1612_s14  ;;  %p1618_p7 = scmp.lt.s32.totalorder %s1612_s14, %s1612_s14 }
  0x15   :  { %p1619_p8 = por %p1618_p7, %p1617_p6 }
  0x17   :  { %p1620_p9 = pnand %p1619_p8, %p1613_p5 }
  0x19   :  { %1623 = shalt.err (!%p1620_p9)
}
  0x1a   :  { %75 = dma.hbm_to_vmem [thread:$0]  %s1954_s6, 3072, %s70_s29, [#allocation9], %s1735_s24, %s1735_s24, %s1736_s25  }
  0x1b   :  { %s1632_s17 = scalar_lea.vmem %s28_s13, 512  ;;  %p1637_p11 = scmp.lt.s32.totalorder %s28_s13, %s28_s13 }
  0x1c   :  { %p1633_p10 = scmp.ne.s32.totalorder %s28_s13, %s1632_s17  ;;  %p1638_p12 = scmp.lt.s32.totalorder %s1632_s17, %s1632_s17 }
  0x1e   :  { %p1639_p13 = por %p1638_p12, %p1637_p11 }
  0x20   :  { %p1640_p0 = pnand %p1639_p13, %p1633_p10 }
  0x22   :  { %1643 = shalt.err (!%p1640_p0)
}
  0x23   :  { %s1739_s1 = smov 128   ;;  %s1740_s18 = smov 8  }
  0x24   :  { %33 = dma.hbm_to_vmem [thread:$0]  %s1948_s0, 512, %s28_s13, [#allocation3], %s1739_s1, %s1739_s1, %s1740_s18  }
  0x25   :  { %s1741_s21 = smov [#allocation7]  }
  0x26   :  { %s53_s22 = sshll.u32 %s1741_s21, 4  ;;  %s54_s22 = int_to_ptr.vmem [resolvable:$true] %s53_s22 }
  0x27   :  { %s1652_s6 = scalar_lea.vmem %s54_s22, 1024  ;;  %p1657_p2 = scmp.lt.s32.totalorder %s54_s22, %s54_s22 }
  0x28   :  { %p1653_p1 = scmp.ne.s32.totalorder %s54_s22, %s1652_s6  ;;  %p1658_p3 = scmp.lt.s32.totalorder %s1652_s6, %s1652_s6 }
  0x2a   :  { %p1659_p4 = por %p1658_p3, %p1657_p2 }
  0x2c   :  { %p1660_p5 = pnand %p1659_p4, %p1653_p1 }
  0x2e   :  { %1663 = shalt.err (!%p1660_p5)
}
  0x2f   :  { %s1742_s23 = smov 64   ;;  %s1743_s24 = smov 4  }
  0x30   :  { %59 = dma.hbm_to_vmem [thread:$0]  %s1951_s3, 1024, %s54_s22, [#allocation6], %s1742_s23, %s1742_s23, %s1743_s24  }
  0x31   :  { %s1744_s27 = smov [#allocation10]   ;;  %s1745_s29 = smov [#allocation11]  }
  0x32   :  { %s83_s28 = sshll.u32 %s1744_s27, 4  ;;  %s99_s0 = sshll.u32 %s1745_s29, 4  ;;  %s84_s28 = int_to_ptr.vmem [resolvable:$true] %s83_s28  ;;  %s100_s0 = int_to_ptr.vmem [resolvable:$true] %s99_s0 }
  0x33   :  { %s1672_s30 = scalar_lea.vmem %s84_s28, 1024  ;;  %p1677_p7 = scmp.lt.s32.totalorder %s84_s28, %s84_s28 }
  0x34   :  { %p1673_p6 = scmp.ne.s32.totalorder %s84_s28, %s1672_s30  ;;  %p1678_p8 = scmp.lt.s32.totalorder %s1672_s30, %s1672_s30 }
  0x36   :  { %p1679_p9 = por %p1678_p8, %p1677_p7 }
  0x38   :  { %p1680_p10 = pnand %p1679_p9, %p1673_p6 }
  0x3a   :  { %1683 = shalt.err (!%p1680_p10)
}
  0x3b   :  { %89 = dma.hbm_to_vmem [thread:$0]  %s1956_s8, 1024, %s84_s28, [#allocation9], %s1742_s23, %s1742_s23, %s1743_s24  }
  0x3c   :  { %s1692_s15 = scalar_lea.vmem %s100_s0, 1024  ;;  %p1697_p12 = scmp.lt.s32.totalorder %s100_s0, %s100_s0 }
  0x3d   :  { %p1693_p11 = scmp.ne.s32.totalorder %s100_s0, %s1692_s15  ;;  %p1698_p13 = scmp.lt.s32.totalorder %s1692_s15, %s1692_s15 }
  0x3f   :  { %p1699_p0 = por %p1698_p13, %p1697_p12 }
  0x41   :  { %p1700_p1 = pnand %p1699_p0, %p1693_p11 }
  0x43   :  { %1703 = shalt.err (!%p1700_p1)
}
  0x44   :  { %105 = dma.hbm_to_vmem [thread:$0]  %s1959_s11, 1024, %s100_s0, [#allocation12], %s1742_s23, %s1742_s23, %s1743_s24  }
  0x45   :  { %1724 = dma.done.wait [#allocation3], 512  }
  0x46   :  { %1725 = vsyncadd [#allocation3], 4294966784 }
  0x47   :  { %1726 = dma.done.wait [#allocation6], 4096  }
  0x48   :  { %1727 = vsyncadd [#allocation6], 4294963200 }
  0x49   :  { %1728 = dma.done.wait [#allocation9], 4096  }
  0x4a   :  { %1729 = vsyncadd [#allocation9], 4294963200 }
  0x4b   :  { %1730 = dma.done.wait [#allocation12], 1024  }
  0x4c   :  { %1731 = vsyncadd [#allocation12], 4294966272  ;;  %v1746_v0 = vmov 0   ;;  %v1492_v1 = vld [vmem:[#allocation5 + $0xac] ss:$12 sps:$4 sm:$0xff]   ;;  %v1838_v18 = vld [vmem:[#allocation2] sm:$0xff]  ;;  %v129_v50 = vlaneseq }
  0x4d   :  { %326 = vmatprep.mubr.bf16.mxu0 %v1746_v0  ;;  %v1494_v2 = vld [vmem:[#allocation5 + $0xb0] ss:$12 sps:$4 sm:$0xff]   ;;  %294 = vmatprep.subr.bf16.mxu0 %v1492_v1  ;;  %v1495_v3 = vld [vmem:[#allocation5 + $0xa8] ss:$12 sps:$4 sm:$0xff]   ;;  %v1498_v5 = vld [vmem:[#allocation5 + $0x98] ss:$12 sps:$4 sm:$0xff]  }
  0x4e   :  { %1375 = vmatprep.subr.bf16.mxu1 %v1494_v2  ;;  %v1496_v4 = vld [vmem:[#allocation5 + $0x94] ss:$12 sps:$4 sm:$0xff]   ;;  %295 = vmatpush1.bf16.msra.mxu0 %v1495_v3  ;;  %v1499_v6 = vld [vmem:[#allocation5 + $0x90] ss:$12 sps:$4 sm:$0xff]   ;;  %v1503_v9 = vld [vmem:[#allocation5 + $0x78] ss:$12 sps:$4 sm:$0xff]  }
  0x4f   :  { %1376 = vmatpush3.bf16.msra.mxu1 %v1494_v2  ;;  %296 = vmatprep.subr.bf16.mxu0 %v1496_v4  ;;  %v1500_v7 = vld [vmem:[#allocation5 + $0x7c] ss:$12 sps:$4 sm:$0xff]   ;;  %v1502_v8 = vld [vmem:[#allocation5 + $0x80] ss:$12 sps:$4 sm:$0xff]   ;;  %v1504_v10 = vld [vmem:[#allocation5 + $0x64] ss:$12 sps:$4 sm:$0xff]  }
  0x50   :  { %1377 = vmatprep.subr.bf16.mxu1 %v1498_v5  ;;  %v1506_v11 = vld [vmem:[#allocation5 + $0x68] ss:$12 sps:$4 sm:$0xff]   ;;  %v1507_v12 = vld [vmem:[#allocation5 + $0x60] ss:$12 sps:$4 sm:$0xff]   ;;  %v1510_v14 = vld [vmem:[#allocation5 + $0x50] ss:$12 sps:$4 sm:$0xff]  }
  0x51   :  { %v1508_v13 = vld [vmem:[#allocation5 + $0x4c] ss:$12 sps:$4 sm:$0xff]   ;;  %v1511_v15 = vld [vmem:[#allocation5 + $0x48] ss:$12 sps:$4 sm:$0xff]   ;;  %v1515_v19 = vld [vmem:[#allocation5 + $0x30] ss:$12 sps:$4 sm:$0xff]  }
  0x52   :  { %297 = vmatpush1.bf16.msra.mxu0 %v1499_v6  ;;  %v1512_v16 = vld [vmem:[#allocation5 + $0x34] ss:$12 sps:$4 sm:$0xff]   ;;  %v1514_v17 = vld [vmem:[#allocation5 + $0x38] ss:$12 sps:$4 sm:$0xff]   ;;  %v1516_v20 = vld [vmem:[#allocation5 + $0x1c] ss:$12 sps:$4 sm:$0xff]  }
  0x53   :  { %1378 = vmatpush3.bf16.msra.mxu1 %v1498_v5  ;;  %298 = vmatprep.subr.bf16.mxu0 %v1500_v7  ;;  %v1840_v21 = vld [vmem:[#allocation2 + $0x8] sm:$0xff]  ;;  %v1519_v24 = vld [vmem:[#allocation5 + $0x18] ss:$12 sps:$4 sm:$0xff]   ;;  %v1844_v28 = vld [vmem:[#allocation2 + $0x10] sm:$0xff]  ;;  %v1855_v53 = vshrl.u32 %v129_v50, 7  ;;  %vm1748_vm8 = vmmov 0  }
  0x54   :  { %1379 = vmatprep.subr.bf16.mxu1 %v1502_v8  ;;  %v1518_v22 = vld [vmem:[#allocation5 + $0x20] ss:$12 sps:$4 sm:$0xff]   ;;  %v132_v23 = vpack.c.bf16 %v1840_v21, %v1838_v18  ;;  %v1520_v25 = vld [vmem:[#allocation5 + $0x4] ss:$12 sps:$4 sm:$0xff]   ;;  %v1522_v26 = vld [vmem:[#allocation5 + $0x8] ss:$12 sps:$4 sm:$0xff]  }
  0x55   :  { %v1523_v27 = vld [vmem:[#allocation5] ss:$12 sps:$4 sm:$0xff]   ;;  %v1846_v29 = vld [vmem:[#allocation2 + $0x18] sm:$0xff]  ;;  %v1525_v32 = vld [vmem:[#allocation7 + $0x30] sm:$0xff]   ;;  %vm402_vm0 = vcmp.lt.s32.totalorder %v1855_v53, 1  ;;  %v1859_v60 = vadd.s32 8, %v1855_v53 }
  0x56   :  { %299 = vmatpush1.bf16.msra.mxu0 %v1503_v9  ;;  %1391 = vmatprep.mubr.bf16.mxu1 %v132_v23  ;;  %v1524_v30 = vld [vmem:[#allocation7 + $0x38] sm:$0xff]   ;;  %v133_v31 = vpack.c.bf16 %v1846_v29, %v1844_v28  ;;  %v1526_v33 = vld [vmem:[#allocation7 + $0x28] sm:$0xff]   ;;  %v1527_v34 = vld [vmem:[#allocation7 + $0x20] sm:$0xff]   ;;  %vm417_vm1 = vcmp.lt.s32.totalorder %v1855_v53, 7  ;;  %vm396_vm2 = vcmp.ge.s32.totalorder %v1855_v53, 1  ;;  %vm860_vm4 = vcmp.lt.s32.totalorder %v1855_v53, 2 }
  0x57   :  { %1380 = vmatpush3.bf16.msra.mxu1 %v1502_v8  ;;  %300 = vmatprep.subr.bf16.mxu0 %v1504_v10  ;;  %v1528_v35 = vld [vmem:[#allocation7 + $0x18] sm:$0xff]   ;;  %v1529_v36 = vld [vmem:[#allocation7 + $0x10] sm:$0xff]   ;;  %v1530_v37 = vld [vmem:[#allocation7 + $0x8] sm:$0xff]   ;;  %vm412_vm3 = vcmp.lt.s32.totalorder %v1859_v60, 15  ;;  %vm875_vm5 = vcmp.lt.s32.totalorder %v1855_v53, 6  ;;  %vm854_vm6 = vcmp.ge.s32.totalorder %v1855_v53, 2 }
  0x58   :  { %1381 = vmatprep.subr.bf16.mxu1 %v1506_v11  ;;  %v1531_v38 = vld [vmem:[#allocation7] sm:$0xff]   ;;  %v1532_v39 = vld [vmem:[#allocation8 + $0xa8] ss:$12 sps:$4 sm:$0xff]   ;;  %v1534_v40 = vld [vmem:[#allocation8 + $0xac] ss:$12 sps:$4 sm:$0xff]   ;;  %vm870_vm7 = vcmp.lt.s32.totalorder %v1859_v60, 14 }
  0x59   :  { %v1852_v41 = vld [vmem:[#allocation8 + $0xb0] ss:$12 sps:$4 sm:$0xff]   ;;  %v1538_v42 = vld [vmem:[#allocation8 + $0x94] ss:$12 sps:$4 sm:$0xff]   ;;  %v1540_v45 = vld [vmem:[#allocation8 + $0x78] ss:$12 sps:$4 sm:$0xff]  }
  0x5a   :  { %301 = vmatpush1.bf16.msra.mxu0 %v1507_v12  ;;  %v1536_v43 = vld [vmem:[#allocation8 + $0x90] ss:$12 sps:$4 sm:$0xff]   ;;  %v1544_v47 = vld [vmem:[#allocation8 + $0x60] ss:$12 sps:$4 sm:$0xff]   ;;  %v1548_v49 = vld [vmem:[#allocation8 + $0x48] ss:$12 sps:$4 sm:$0xff]  }
  0x5b   :  { %1382 = vmatpush3.bf16.msra.mxu1 %v1506_v11  ;;  %302 = vmatprep.subr.bf16.mxu0 %v1508_v13  ;;  %v1542_v44 = vld [vmem:[#allocation8 + $0x7c] ss:$12 sps:$4 sm:$0xff]   ;;  %v1546_v46 = vld [vmem:[#allocation8 + $0x64] ss:$12 sps:$4 sm:$0xff]   ;;  %v1550_v48 = vld [vmem:[#allocation8 + $0x4c] ss:$12 sps:$4 sm:$0xff]  }
  0x5c   :  { %1383 = vmatprep.subr.bf16.mxu1 %v1510_v14  ;;  %v1554_v50 = vld [vmem:[#allocation8 + $0x34] ss:$12 sps:$4 sm:$0xff]   ;;  %v1747_v60 = vmov 0.0   ;;  %vm1080_vm9 = vcmask 1041409  }
  0x5e   :  { %303 = vmatpush1.bf16.msra.mxu0 %v1511_v15 }
  0x5f   :  { %1384 = vmatpush3.bf16.msra.mxu1 %v1510_v14  ;;  %304 = vmatprep.subr.bf16.mxu0 %v1512_v16 }
  0x60   :  { %1385 = vmatprep.subr.bf16.mxu1 %v1514_v17 }
  0x62   :  { %305 = vmatpush1.bf16.msra.mxu0 %v1515_v19 }
  0x63   :  { %1386 = vmatpush3.bf16.msra.mxu1 %v1514_v17  ;;  %306 = vmatprep.subr.bf16.mxu0 %v1516_v20 }
  0x64   :  { %1387 = vmatprep.subr.bf16.mxu1 %v1518_v22 }
  0x66   :  { %307 = vmatpush1.bf16.msra.mxu0 %v1519_v24 }
  0x67   :  { %1388 = vmatpush3.bf16.msra.mxu1 %v1518_v22  ;;  %308 = vmatprep.subr.bf16.mxu0 %v1520_v25  ;;  %v1271_v25 = vld [vmem:[%s1950_s2] ss:$0 sm:$0xff] }
  0x68   :  { %1389 = vmatprep.subr.bf16.mxu1 %v1522_v26 }
  0x6a   :  { %309 = vmatpush1.bf16.msra.mxu0 %v1523_v27 }
  0x6b   :  { %1390 = vmatpush3.bf16.msra.mxu1 %v1522_v26  ;;  %1395 = vmatprep.subr.bf16.mxu0 %v1524_v30 }
  0x6c   :  { %752 = vmatprep.subr.bf16.mxu1 %v1534_v40 }
  0x6d   :  { %327 = vmatmul.mubr.bf16.vlgmr.msra.gmra.mxu0 %v132_v23 }
  0x6e   :  { %1392 = vmatmul.mubr.bf16.vlgmr.msra.gmra.mxu1 %v133_v31  ;;  %336 = vmatprep.mubr.bf16.mxu0 %v1746_v0 }
  0x6f   :  { %1396 = vmatpush3.bf16.msra.mxu0 %v1524_v30  ;;  %784 = vmatprep.mubr.bf16.mxu1 %v1746_v0 }
  0x70   :  { %1397 = vmatprep.subr.bf16.mxu0 %v1525_v32  ;;  %753 = vmatpush1.bf16.msra.mxu1 %v1532_v39 }
  0x71   :  { %754 = vmatprep.subr.bf16.mxu1 %v1538_v42 }
  0x73   :  { %1398 = vmatpush3.bf16.msra.mxu0 %v1525_v32 }
  0x74   :  { %1399 = vmatprep.subr.bf16.mxu0 %v1526_v33  ;;  %755 = vmatpush1.bf16.msra.mxu1 %v1536_v43 }
  0x75   :  { %337 = vmatmul.mubr.bf16.gmra.mxu0 %v133_v31  ;;  %756 = vmatprep.subr.bf16.mxu1 %v1542_v44 }
  0x77   :  { %1400 = vmatpush3.bf16.msra.mxu0 %v1526_v33 }
  0x78   :  { %1401 = vmatprep.subr.bf16.mxu0 %v1527_v34  ;;  %757 = vmatpush1.bf16.msra.mxu1 %v1540_v45 }
  0x79   :  { %758 = vmatprep.subr.bf16.mxu1 %v1546_v46  ;;  %v1539_v46 = vld [vmem:[#allocation8 + $0x98] ss:$12 sps:$4 sm:$0xff]  }
  0x7b   :  { %1402 = vmatpush3.bf16.msra.mxu0 %v1527_v34 }
  0x7c   :  { %1403 = vmatprep.subr.bf16.mxu0 %v1528_v35  ;;  %759 = vmatpush1.bf16.msra.mxu1 %v1544_v47  ;;  %v1543_v47 = vld [vmem:[#allocation8 + $0x80] ss:$12 sps:$4 sm:$0xff]  }
  0x7d   :  { %760 = vmatprep.subr.bf16.mxu1 %v1550_v48  ;;  %v1547_v48 = vld [vmem:[#allocation8 + $0x68] ss:$12 sps:$4 sm:$0xff]  }
  0x7f   :  { %1404 = vmatpush3.bf16.msra.mxu0 %v1528_v35 }
  0x80   :  { %1405 = vmatprep.subr.bf16.mxu0 %v1529_v36  ;;  %761 = vmatpush1.bf16.msra.mxu1 %v1548_v49  ;;  %v1551_v49 = vld [vmem:[#allocation8 + $0x50] ss:$12 sps:$4 sm:$0xff]  }
  0x81   :  { %762 = vmatprep.subr.bf16.mxu1 %v1554_v50 }
  0x83   :  { %1406 = vmatpush3.bf16.msra.mxu0 %v1529_v36 }
  0x84   :  { %1407 = vmatprep.subr.bf16.mxu0 %v1530_v37 }
  0x87   :  { %1408 = vmatpush3.bf16.msra.mxu0 %v1530_v37 }
  0x88   :  { %1409 = vmatprep.subr.bf16.mxu0 %v1531_v38 }
  0x8b   :  { %1410 = vmatpush3.bf16.msra.mxu0 %v1531_v38 }
  0x8c   :  { %1415 = vmatprep.subr.bf16.mxu0 %v1852_v41 }
 0x12d   :  { %v328_v51 = vpop.f32.mrf.mxu0 }
 0x12e   :  { %v1393_v52 = vpop.f32.mrf.mxu1  ;;  %v398_v61 = vrot.slane %v328_v51, 7  ;;  %v1552_v51 = vld [vmem:[#allocation8 + $0x30] ss:$12 sps:$4 sm:$0xff]  }
 0x12f   :  { %v330_v54 = vpop.f32.mrf.mxu0  ;;  %v415_v58 = vrot.slane %v1393_v52, 1  ;;  %v1555_v52 = vld [vmem:[#allocation8 + $0x38] ss:$12 sps:$4 sm:$0xff]   ;;  %763 = vmatpush1.bf16.msra.mxu1 %v1552_v51 }
 0x130   :  { %v381_v55 = vpop.f32.mrf.mxu1 }
 0x131   :  { %v332_v56 = vpop.f32.mrf.mxu0  ;;  %v413_v6 = vrot.slane %v381_v55, 1  ;;  %v1559_v55 = vld [vmem:[#allocation8 + $0x20] ss:$12 sps:$4 sm:$0xff]  }
 0x132   :  { %v1394_v57 = vpop.f32.mrf.mxu1  ;;  %v399_v59 = vrot.slane %v332_v56, 7  ;;  %v1562_v56 = vld [vmem:[#allocation8 + $0x4] ss:$12 sps:$4 sm:$0xff]  }
 0x133   :  { %v334_v62 = vpop.f32.mrf.mxu0  ;;  %v416_v7 = vrot.slane %v1394_v57, 1  ;;  %v1560_v57 = vld [vmem:[#allocation8] ss:$12 sps:$4 sm:$0xff]  }
 0x134   :  { %v384_v63 = vpop.f32.mrf.mxu1  ;;  %v405_v2 = vsel %vm402_vm0, %v398_v61, %v399_v59 }
 0x135   :  { %v414_v1 = vrot.slane %v384_v63, 1  ;;  %v338_v3 = vpop.f32.mrf.mxu0  ;;  %v427_v9 = vadd.f32 %v405_v2, %v334_v62  ;;  %v421_v17 = vsel %vm417_vm1, %v416_v7, %v413_v6  ;;  %v418_v19 = vsel %vm417_vm1, %v415_v58, %v416_v7  ;;  %v1280_v62 = vld [vmem:[%s1952_s4] ss:$0 sm:$0xff] }
 0x136   :  { %v400_v5 = vrot.slane %v338_v3, 7  ;;  %v425_v31 = vsel %vm412_vm3, %v421_v17, 0.0 }
 0x137   :  { %v419_v4 = vsel %vm417_vm1, %v414_v1, %v415_v58  ;;  %v340_v8 = vpop.f32.mrf.mxu0  ;;  %v420_v32 = vsel %vm417_vm1, %v413_v6, %v414_v1  ;;  %v1563_v58 = vld [vmem:[#allocation8 + $0x8] ss:$12 sps:$4 sm:$0xff]  }
 0x138   :  { %v404_v10 = vsel %vm402_vm0, %v399_v59, %v400_v5  ;;  %v423_v13 = vsel %vm412_vm3, %v419_v4, 0.0  ;;  %v1564_v59 = vld [vmem:[#allocation10 + $0x38] sm:$0xff]   ;;  %v1281_v4 = vld [vmem:[%s1953_s5] ss:$0 sm:$0xff] }
 0x139   :  { %v409_v11 = vsel %vm396_vm2, %v404_v10, 0.0  ;;  %v342_v12 = vpop.f32.mrf.mxu0  ;;  %v431_v23 = vadd.f32 %v427_v9, %v423_v13 }
 0x13a   :  { %v428_v14 = vadd.f32 %v409_v11, %v340_v8  ;;  %v401_v15 = vrot.slane %v342_v12, 7 }
 0x13b   :  { %v344_v16 = vpop.f32.mrf.mxu0  ;;  %v442_v35 = vadd.f32 %v1271_v25, %v431_v23  ;;  %v1568_v23 = vld [vmem:[#allocation10 + $0x18] sm:$0xff]  }
 0x13c   :  { %v406_v20 = vsel %vm402_vm0, %v401_v15, %v398_v61  ;;  %v403_v22 = vsel %vm402_vm0, %v400_v5, %v401_v15  ;;  %v432_v24 = vadd.f32 %v428_v14, %v418_v19  ;;  %v1565_v19 = vld [vmem:[#allocation10 + $0x30] sm:$0xff]  }
 0x13d   :  { %v407_v26 = vsel %vm396_vm2, %v406_v20, 0.0  ;;  %v429_v27 = vadd.f32 %v403_v22, %v344_v16  ;;  %v446_v42 = vmax.f32 %v442_v35, 0.0  ;;  %v1566_v20 = vld [vmem:[#allocation10 + $0x28] sm:$0xff]   ;;  %v1567_v22 = vld [vmem:[#allocation10 + $0x20] sm:$0xff]  }
 0x13e   :  { %v426_v30 = vadd.f32 %v407_v26, %v330_v54  ;;  %v443_v36 = vadd.f32 %v1271_v25, %v432_v24  ;;  %v1558_v54 = vld [vmem:[#allocation8 + $0x1c] ss:$12 sps:$4 sm:$0xff]   ;;  %v1569_v24 = vld [vmem:[#allocation10 + $0x10] sm:$0xff]  }
 0x13f   :  { %v433_v33 = vadd.f32 %v429_v27, %v425_v31  ;;  %764 = vmatprep.subr.bf16.mxu1 %v1558_v54 }
 0x140   :  { %v430_v34 = vadd.f32 %v426_v30, %v420_v32  ;;  %v447_v43 = vmax.f32 %v443_v36, 0.0 }
 0x141   :  { %v444_v37 = vadd.f32 %v1271_v25, %v433_v33 }
 0x142   :  { %v441_v38 = vadd.f32 %v1271_v25, %v430_v34  ;;  %v1570_v25 = vld [vmem:[#allocation10 + $0x8] sm:$0xff]  }
 0x143   :  { %v448_v39 = vmax.f32 %v444_v37, 0.0 }
 0x144   :  { %v445_v40 = vmax.f32 %v441_v38, 0.0 }
 0x145   :  { %v450_v45 = vpack.c.bf16 %v448_v39, %v447_v43 }
 0x146   :  { %v449_v44 = vpack.c.bf16 %v446_v42, %v445_v40 }
 0x148   :  { %1411 = vmatprep.mubr.bf16.mxu0 %v449_v44 }
 0x149   :  { %1412 = vmatmul.mubr.bf16.vlgmr.msra.gmra.mxu0 %v450_v45 }
 0x14a   :  { %1416 = vmatpush3.bf16.msra.mxu0 %v1852_v41  ;;  %v1556_v41 = vld [vmem:[#allocation8 + $0x18] ss:$12 sps:$4 sm:$0xff]  }
 0x14b   :  { %1417 = vmatprep.subr.bf16.mxu0 %v1539_v46  ;;  %765 = vmatpush1.bf16.msra.mxu1 %v1556_v41 }
 0x14c   :  { %766 = vmatprep.subr.bf16.mxu1 %v1562_v56 }
 0x14e   :  { %1418 = vmatpush3.bf16.msra.mxu0 %v1539_v46 }
 0x14f   :  { %1419 = vmatprep.subr.bf16.mxu0 %v1543_v47  ;;  %767 = vmatpush1.bf16.msra.mxu1 %v1560_v57 }
 0x150   :  { %1435 = vmatprep.subr.bf16.mxu1 %v1564_v59 }
 0x152   :  { %1420 = vmatpush3.bf16.msra.mxu0 %v1543_v47 }
 0x153   :  { %1421 = vmatprep.subr.bf16.mxu0 %v1547_v48 }
 0x156   :  { %1422 = vmatpush3.bf16.msra.mxu0 %v1547_v48 }
 0x157   :  { %1423 = vmatprep.subr.bf16.mxu0 %v1551_v49 }
 0x15a   :  { %1424 = vmatpush3.bf16.msra.mxu0 %v1551_v49 }
 0x15b   :  { %1425 = vmatprep.subr.bf16.mxu0 %v1555_v52 }
 0x15e   :  { %1426 = vmatpush3.bf16.msra.mxu0 %v1555_v52 }
 0x15f   :  { %1427 = vmatprep.subr.bf16.mxu0 %v1559_v55 }
 0x162   :  { %1428 = vmatpush3.bf16.msra.mxu0 %v1559_v55 }
 0x163   :  { %1429 = vmatprep.subr.bf16.mxu0 %v1563_v58 }
 0x166   :  { %1430 = vmatpush3.bf16.msra.mxu0 %v1563_v58 }
 0x167   :  { %1455 = vmatprep.subr.bf16.mxu0 %v1747_v60 }
 0x209   :  { %v1413_v61 = vpop.f32.mrf.mxu0 }
 0x20a   :  { %v573_v2 = vmul.f32 %v1413_v61, %v1280_v62 }
 0x20b   :  { %v549_v63 = vpop.f32.mrf.mxu0 }
 0x20c   :  { %v571_v1 = vmul.f32 %v1280_v62, %v549_v63  ;;  %v584_v10 = vadd.f32 %v1281_v4, %v573_v2  ;;  %v1306_v63 = vld [vmem:[%s1955_s7] ss:$0 sm:$0xff] }
 0x20d   :  { %v1414_v3 = vpop.f32.mrf.mxu0 }
 0x20e   :  { %v574_v5 = vmul.f32 %v1414_v3, %v1280_v62  ;;  %v582_v7 = vadd.f32 %v1281_v4, %v571_v1  ;;  %v588_v15 = vmax.f32 %v584_v10, 0.0 }
 0x20f   :  { %v552_v6 = vpop.f32.mrf.mxu0 }
 0x210   :  { %v585_v8 = vadd.f32 %v1281_v4, %v574_v5  ;;  %v572_v9 = vmul.f32 %v1280_v62, %v552_v6  ;;  %v586_v13 = vmax.f32 %v582_v7, 0.0 }
 0x212   :  { %v583_v11 = vadd.f32 %v1281_v4, %v572_v9  ;;  %v589_v12 = vmax.f32 %v585_v8, 0.0 }
 0x214   :  { %v587_v14 = vmax.f32 %v583_v11, 0.0  ;;  %v591_v17 = vpack.c.bf16 %v589_v12, %v588_v15 }
 0x216   :  { %v590_v16 = vpack.c.bf16 %v587_v14, %v586_v13 }
 0x218   :  { %785 = vmatmul.mubr.bf16.vlgmr.msra.gmra.mxu1 %v590_v16  ;;  %1431 = vmatprep.mubr.bf16.mxu0 %v590_v16 }
 0x219   :  { %1432 = vmatmul.mubr.bf16.vlgmr.msra.gmra.mxu0 %v591_v17  ;;  %794 = vmatprep.mubr.bf16.mxu1 %v1746_v0  ;;  %v1571_v0 = vld [vmem:[#allocation10] sm:$0xff]  }
 0x21a   :  { %1436 = vmatpush3.bf16.msra.mxu1 %v1564_v59  ;;  %1471 = vmatprep.mubr.msk.bf16.mxu0 %vm1748_vm8, %v1747_v60 }
 0x21b   :  { %1437 = vmatprep.subr.bf16.mxu1 %v1565_v19 }
 0x21e   :  { %1438 = vmatpush3.bf16.msra.mxu1 %v1565_v19  ;;  %v1572_v19 = vld [vmem:[#allocation11 + $0x38] sm:$0xff]  }
 0x21f   :  { %1439 = vmatprep.subr.bf16.mxu1 %v1566_v20  ;;  %1456 = vmatpush3.bf16.msra.mxu0 %v1572_v19 }
 0x220   :  { %795 = vmatmul.mubr.bf16.gmra.mxu1 %v591_v17  ;;  %1457 = vmatprep.subr.bf16.mxu0 %v1747_v60 }
 0x222   :  { %1440 = vmatpush3.bf16.msra.mxu1 %v1566_v20  ;;  %v1573_v20 = vld [vmem:[#allocation11 + $0x30] sm:$0xff]  }
 0x223   :  { %1441 = vmatprep.subr.bf16.mxu1 %v1567_v22  ;;  %1458 = vmatpush3.bf16.msra.mxu0 %v1573_v20 }
 0x224   :  { %1459 = vmatprep.subr.bf16.mxu0 %v1747_v60 }
 0x226   :  { %1442 = vmatpush3.bf16.msra.mxu1 %v1567_v22  ;;  %v1574_v22 = vld [vmem:[#allocation11 + $0x28] sm:$0xff]  }
 0x227   :  { %1443 = vmatprep.subr.bf16.mxu1 %v1568_v23  ;;  %1460 = vmatpush3.bf16.msra.mxu0 %v1574_v22 }
 0x228   :  { %1461 = vmatprep.subr.bf16.mxu0 %v1747_v60 }
 0x22a   :  { %1444 = vmatpush3.bf16.msra.mxu1 %v1568_v23  ;;  %v1575_v23 = vld [vmem:[#allocation11 + $0x20] sm:$0xff]  }
 0x22b   :  { %1445 = vmatprep.subr.bf16.mxu1 %v1569_v24  ;;  %1462 = vmatpush3.bf16.msra.mxu0 %v1575_v23 }
 0x22c   :  { %1463 = vmatprep.subr.bf16.mxu0 %v1747_v60 }
 0x22e   :  { %1446 = vmatpush3.bf16.msra.mxu1 %v1569_v24  ;;  %v1576_v24 = vld [vmem:[#allocation11 + $0x18] sm:$0xff]  }
 0x22f   :  { %1447 = vmatprep.subr.bf16.mxu1 %v1570_v25  ;;  %1464 = vmatpush3.bf16.msra.mxu0 %v1576_v24 }
 0x230   :  { %1465 = vmatprep.subr.bf16.mxu0 %v1747_v60 }
 0x232   :  { %1448 = vmatpush3.bf16.msra.mxu1 %v1570_v25  ;;  %v1577_v25 = vld [vmem:[#allocation11 + $0x10] sm:$0xff]  }
 0x233   :  { %1449 = vmatprep.subr.bf16.mxu1 %v1571_v0  ;;  %1466 = vmatpush3.bf16.msra.mxu0 %v1577_v25 }
 0x234   :  { %1467 = vmatprep.subr.bf16.mxu0 %v1747_v60 }
 0x236   :  { %1450 = vmatpush3.bf16.msra.mxu1 %v1571_v0  ;;  %v1578_v0 = vld [vmem:[#allocation11 + $0x8] sm:$0xff]  }
 0x237   :  { %1468 = vmatpush3.bf16.msra.mxu0 %v1578_v0 }
 0x238   :  { %1469 = vmatprep.subr.bf16.mxu0 %v1747_v60 }
 0x2d8   :  { %v786_v26 = vpop.f32.mrf.mxu1 }
 0x2d9   :  { %v1433_v27 = vpop.f32.mrf.mxu0  ;;  %v856_v37 = vrot.slane %v786_v26, 6  ;;  %v1579_v26 = vld [vmem:[#allocation11] sm:$0xff]  }
 0x2da   :  { %v788_v30 = vpop.f32.mrf.mxu1  ;;  %v873_v38 = vrot.slane %v1433_v27, 2  ;;  %1470 = vmatpush3.bf16.msra.mxu0 %v1579_v26 }
 0x2db   :  { %v839_v31 = vpop.f32.mrf.mxu0 }
 0x2dc   :  { %v790_v32 = vpop.f32.mrf.mxu1  ;;  %v871_v48 = vrot.slane %v839_v31, 2 }
 0x2dd   :  { %v1434_v33 = vpop.f32.mrf.mxu0  ;;  %v857_v34 = vrot.slane %v790_v32, 6 }
 0x2de   :  { %v792_v35 = vpop.f32.mrf.mxu1  ;;  %v874_v43 = vrot.slane %v1434_v33, 2  ;;  %v1316_v33 = vld [vmem:[%s1958_s10] ss:$0 sm:$0xff] }
 0x2df   :  { %v842_v36 = vpop.f32.mrf.mxu0  ;;  %v863_v44 = vsel %vm860_vm4, %v856_v37, %v857_v34 }
 0x2e0   :  { %v872_v39 = vrot.slane %v842_v36, 2  ;;  %v796_v40 = vpop.f32.mrf.mxu1  ;;  %v885_v52 = vadd.f32 %v863_v44, %v792_v35  ;;  %v879_v56 = vsel %vm875_vm5, %v874_v43, %v871_v48  ;;  %v876_v57 = vsel %vm875_vm5, %v873_v38, %v874_v43 }
 0x2e1   :  { %v858_v42 = vrot.slane %v796_v40, 6  ;;  %v883_v4 = vsel %vm870_vm7, %v879_v56, 0.0 }
 0x2e2   :  { %v877_v45 = vsel %vm875_vm5, %v872_v39, %v873_v38  ;;  %v798_v46 = vpop.f32.mrf.mxu1  ;;  %v878_v5 = vsel %vm875_vm5, %v871_v48, %v872_v39 }
 0x2e3   :  { %v862_v47 = vsel %vm860_vm4, %v857_v34, %v858_v42  ;;  %v881_v51 = vsel %vm870_vm7, %v877_v45, 0.0 }
 0x2e4   :  { %v867_v49 = vsel %vm854_vm6, %v862_v47, 0.0  ;;  %v800_v50 = vpop.f32.mrf.mxu1  ;;  %v889_v61 = vadd.f32 %v885_v52, %v881_v51 }
 0x2e5   :  { %v886_v54 = vadd.f32 %v867_v49, %v798_v46  ;;  %v859_v41 = vrot.slane %v800_v50, 6 }
 0x2e6   :  { %v802_v55 = vpop.f32.mrf.mxu1  ;;  %v900_v8 = vadd.f32 %v1306_v63, %v889_v61 }
 0x2e7   :  { %v864_v58 = vsel %vm860_vm4, %v859_v41, %v856_v37  ;;  %v861_v59 = vsel %vm860_vm4, %v858_v42, %v859_v41  ;;  %v890_v62 = vadd.f32 %v886_v54, %v876_v57 }
 0x2e8   :  { %v865_v1 = vsel %vm854_vm6, %v864_v58, 0.0  ;;  %v887_v2 = vadd.f32 %v861_v59, %v802_v55  ;;  %v904_v14 = vmax.f32 %v900_v8, 0.0 }
 0x2e9   :  { %v884_v3 = vadd.f32 %v865_v1, %v788_v30  ;;  %v901_v9 = vadd.f32 %v1306_v63, %v890_v62  ;;  %v1315_v30 = vld [vmem:[%s1957_s9] ss:$0 sm:$0xff]  ;;  %s1750_s9 = smov [#allocation13]  }
 0x2ea   :  { %v891_v6 = vadd.f32 %v887_v2, %v883_v4  ;;  %s1232_s10 = sshll.u32 %s1750_s9, 4  ;;  %s1233_s10 = int_to_ptr.vmem [resolvable:$true] %s1232_s10 }
 0x2eb   :  { %v888_v7 = vadd.f32 %v884_v3, %v878_v5  ;;  %v905_v15 = vmax.f32 %v901_v9, 0.0  ;;  %v1749_v9 = vmov 1966171168   ;;  %s1704_s23 = scalar_lea.vmem %s1233_s10, 512  ;;  %p1709_p3 = scmp.lt.s32.totalorder %s1233_s10, %s1233_s10 }
 0x2ec   :  { %v902_v10 = vadd.f32 %v1306_v63, %v891_v6  ;;  %p1705_p2 = scmp.ne.s32.totalorder %s1233_s10, %s1704_s23  ;;  %p1710_p4 = scmp.lt.s32.totalorder %s1704_s23, %s1704_s23 }
 0x2ed   :  { %v899_v11 = vadd.f32 %v1306_v63, %v888_v7 }
 0x2ee   :  { %v906_v12 = vmax.f32 %v902_v10, 0.0  ;;  %v1180_v10 = vunpack.c.l.s4 %v1749_v9  ;;  %p1711_p5 = por %p1710_p4, %p1709_p3 }
 0x2ef   :  { %v903_v13 = vmax.f32 %v899_v11, 0.0 }
 0x2f0   :  { %v908_v17 = vpack.c.bf16 %v906_v12, %v905_v15  ;;  %v1181_v11 = vunpack.c.0.s8 %v1180_v10  ;;  %v1203_v15 = vsub.s32 0, %v1855_v53  ;;  %p1712_p6 = pnand %p1711_p5, %p1705_p2 }
 0x2f1   :  { %v907_v16 = vpack.c.bf16 %v904_v14, %v903_v13 }
 0x2f2   :  { %v1184_v12 = vsub.s32 %v1181_v11, %v1855_v53 }
 0x2f3   :  { %1451 = vmatprep.mubr.bf16.mxu1 %v907_v16 }
 0x2f4   :  { %1452 = vmatmul.mubr.bf16.vlgmr.msra.gmra.mxu1 %v908_v17 }
 0x3b4   :  { %v1453_v27 = vpop.f32.mrf.mxu1 }
 0x3b5   :  { %v1031_v32 = vmul.f32 %v1453_v27, %v1315_v30 }
 0x3b6   :  { %v1007_v31 = vpop.f32.mrf.mxu1 }
 0x3b7   :  { %v1029_v35 = vmul.f32 %v1315_v30, %v1007_v31  ;;  %v1042_v38 = vadd.f32 %v1316_v33, %v1031_v32 }
 0x3b8   :  { %v1454_v34 = vpop.f32.mrf.mxu1 }
 0x3b9   :  { %v1032_v36 = vmul.f32 %v1454_v34, %v1315_v30  ;;  %v1040_v42 = vadd.f32 %v1316_v33, %v1029_v35 }
 0x3ba   :  { %v1010_v37 = vpop.f32.mrf.mxu1 }
 0x3bb   :  { %v1043_v39 = vadd.f32 %v1316_v33, %v1032_v36  ;;  %v1030_v40 = vmul.f32 %v1315_v30, %v1010_v37 }
 0x3bd   :  { %v1051_v43 = vadd.f32 %v1043_v39, %v1042_v38  ;;  %v1041_v44 = vadd.f32 %v1316_v33, %v1030_v40 }
 0x3bf   :  { %v1052_v45 = vrot.slane %v1051_v43, 4  ;;  %v1044_v46 = vadd.f32 %v1041_v44, %v1040_v42 }
 0x3c1   :  { %v1053_v47 = vadd.f32 %v1052_v45, %v1051_v43  ;;  %v1045_v48 = vrot.slane %v1044_v46, 4 }
 0x3c3   :  { %v1054_v49 = vrot.slane %v1053_v47, 2  ;;  %v1046_v50 = vadd.f32 %v1045_v48, %v1044_v46 }
 0x3c5   :  { %v1055_v51 = vadd.f32 %v1054_v49, %v1053_v47  ;;  %v1047_v52 = vrot.slane %v1046_v50, 2 }
 0x3c7   :  { %v1056_v54 = vrot.slane %v1055_v51, 1  ;;  %v1048_v41 = vadd.f32 %v1047_v52, %v1046_v50 }
 0x3c9   :  { %v1057_v55 = vadd.f32 %v1056_v54, %v1055_v51  ;;  %v1049_v56 = vrot.slane %v1048_v41, 1 }
 0x3cb   :  { %v1059_v57 = vpack.c.bf16 %v1057_v55, %v1057_v55  ;;  %v1050_v58 = vadd.f32 %v1049_v56, %v1048_v41 }
 0x3cd   :  { %v1058_v59 = vpack.c.bf16 %v1050_v58, %v1050_v58  ;;  %v1079_v61 = vunpack.c.l.b16 %v1059_v57 }
 0x3cf   :  { %v1078_v62 = vunpack.c.l.b16 %v1058_v59 }
 0x3d1   :  { %v1081_v63 = vsel %vm1080_vm9, %v1079_v61, %v1078_v62 }
 0x3d2   :  { %v1082_v1 = vpack.c.b16 %v1081_v63, %v1081_v63 }
 0x3d4   :  { %1472 = vmatmul.mubr.bf16.vlgmr.msra.gmra.mxu0 %v1082_v1 }
 0x494   :  { %v1166_v2 = vpop.f32.mrf.mxu0 }
 0x495   :  { %v1325_v3 = vmul.f32 -1.442695, %v1166_v2 }
 0x496   :  { %v1473_v4 = vpop.f32.mrf.mxu0 }
 0x497   :  { %1580 = vpow2.f32 %v1325_v3 }
 0x498   :  { %v1169_v5 = vpop.f32.mrf.mxu0 }
 0x49a   :  { %v1474_v6 = vpop.f32.mrf.mxu0 }
 0x4a4   :  { %v1581_v7 = vpop.eup %1580 }
 0x4a5   :  { %v1175_v8 = vadd.f32 1.0, %v1581_v7 }
 0x4a7   :  { %1582 = vrcp.f32 %v1175_v8 }
 0x4b4   :  { %v1583_v13 = vpop.eup %1582 }
 0x4b5   :  { %v1185_v14 = vrot.slane %v1583_v13, %v1184_v12 }
 0x4b7   :  { %v1186_v16 = vcombine.high %v1185_v14, %v1185_v14  ;;  %v1193_v17 = vrot.slane %v1185_v14, %v1184_v12 }
 0x4b9   :  { %v1200_v19 = vrot.slane %v1186_v16, %v1184_v12  ;;  %v1204_v60 = vrot.slane %v1193_v17, %v1203_v15 }
 0x4bb   :  { %v1208_v20 = vrot.slane %v1200_v19, %v1203_v15  ;;  %v1211_v22 = vmul.f32 %v1204_v60, %v1040_v42  ;;  %v1212_v23 = vmul.f32 %v1204_v60, %v1041_v44 }
 0x4bd   :  { %v1213_v24 = vmul.f32 %v1208_v20, %v1042_v38  ;;  %v1214_v25 = vmul.f32 %v1208_v20, %v1043_v39  ;;  %v1215_v0 = vadd.f32 %v1211_v22, %v1838_v18  ;;  %v1216_v26 = vadd.f32 %v1212_v23, %v1840_v21 }
 0x4bf   :  { %v1217_v27 = vadd.f32 %v1213_v24, %v1844_v28  ;;  %v1218_v30 = vadd.f32 %v1214_v25, %v1846_v29  ;;  %v1219_v53 = vmax.f32 %v1215_v0, 0.0  ;;  %v1220_v31 = vmax.f32 %v1216_v26, 0.0 }
 0x4c1   :  { %v1221_v32 = vmax.f32 %v1217_v27, 0.0  ;;  %v1222_v33 = vmax.f32 %v1218_v30, 0.0  ;;  %1223 = vst [vmem:[#allocation13] sm:$0xff] %v1219_v53  ;;  %1224 = vst [vmem:[#allocation13 + $0x8] sm:$0xff] %v1220_v31 }
 0x4c3   :  { %1225 = vst [vmem:[#allocation13 + $0x10] sm:$0xff] %v1221_v32  ;;  %1226 = vst [vmem:[#allocation13 + $0x18] sm:$0xff] %v1222_v33 }
 0x4c4   :  { %1715 = shalt.err (!%p1712_p6)
}
 0x4c5   :  { %1238 = dma.vmem_to_hbm [thread:$0]  %s1233_s10, 512, %s1960_s12, [#allocation4], %s1739_s1, %s1739_s1, %s1740_s18  }
 0x4c6   :  { %1732 = dma.done.wait [#allocation4], 512  }
 0x4c7   :  { %1733 = vsyncadd [#allocation4], 4294966784 }
 0x4c8   :  { %1242 = vsyncpa [#allocation3], 1 }
 0x4c9   :  { %1243 = vsyncpa [#allocation6], 1 }
 0x4ca   :  { %1244 = vsyncpa [#allocation9], 1 }
 0x4cb   :  { %1245 = vsyncpa [#allocation12], 1 }
 0x4cc   :  { %1246 = vsyncpa [#allocation4], 1 }

</bundles_post_ra>
